<compile_context>
chip_gen: v5e
topology: v5e:2x2
jax: 0.10.0
libtpu: 0.0.40
codegen_flags: <defaults>
</compile_context>

<pallas_src>
import math
from functools import partial

import jax
import jax.numpy as jnp
import numpy as np
from jax.experimental import pallas as pl
from jax.experimental.pallas import tpu as pltpu

LN_EPS = 1e-5       # PyTorch nn.LayerNorm default
NEG_INF = -1e30     # additive key-padding mask value


def _layer_norm_2d(x, w, b):
    # x: (R, D) f32; w, b: (1, D) f32 — statistics kept in f32.
    mu = jnp.mean(x, axis=-1, keepdims=True)
    var = jnp.mean((x - mu) ** 2, axis=-1, keepdims=True)
    return (x - mu) * jax.lax.rsqrt(var + LN_EPS) * w + b


def encoder_kernel(x_ref, keep_ref,
                   ln1w_ref, ln1b_ref, wqkv_ref, bqkv_ref, wo_ref, bo_ref,
                   ln2w_ref, ln2b_ref, w1_ref, b1_ref, w2_ref, b2_ref,
                   out_ref, x_sc, *, num_heads):
    """One (batch tile, layer) grid step.  Activations persist in x_sc."""
    layer = pl.program_id(1)
    Bt, S, D = x_ref.shape
    R = Bt * S
    H = num_heads
    hd = D // H

    # Load the embeddings into the persistent VMEM slab at the first layer step.
    @pl.when(layer == 0)
    def _():
        x_sc[...] = x_ref[...].reshape(R, D).astype(jnp.float32)

    keep = keep_ref[...].astype(jnp.float32)          # (Bt, 1, S): 1 real / 0 pad
    addmask = (1.0 - keep) * NEG_INF                  # (Bt, 1, S), broadcasts over q

    x = x_sc[...]                                     # (R, D) f32

    # ---- self-attention block: x = x + W_o . MHA(LN1(x)) -------------------
    # 1/sqrt(hd) is folded into Wq/bq on the host.
    h = _layer_norm_2d(x, ln1w_ref[...], ln1b_ref[...]).astype(jnp.bfloat16)
    qkv = (jnp.dot(h, wqkv_ref[...], preferred_element_type=jnp.float32)
           + bqkv_ref[...])                           # (R, 3D) f32 — one wide matmul

    head_outs = []
    for hh in range(H):                               # small static loop; slices are static
        q = qkv[:, hh * hd:(hh + 1) * hd].reshape(Bt, S, hd).astype(jnp.bfloat16)
        k = qkv[:, D + hh * hd:D + (hh + 1) * hd].reshape(Bt, S, hd).astype(jnp.bfloat16)
        v = qkv[:, 2 * D + hh * hd:2 * D + (hh + 1) * hd].reshape(Bt, S, hd).astype(jnp.bfloat16)
        s = jnp.einsum("bqd,bkd->bqk", q, k,
                       preferred_element_type=jnp.float32) + addmask   # (Bt, S, S) f32
        s = s - jnp.max(s, axis=-1, keepdims=True)
        p = jnp.exp(s)
        p = p * pl.reciprocal(jnp.sum(p, axis=-1, keepdims=True), approx=True)
        head_outs.append(jnp.einsum("bqk,bkd->bqd", p.astype(jnp.bfloat16), v,
                                    preferred_element_type=jnp.float32))  # (Bt, S, hd)
    o = jnp.concatenate(head_outs, axis=-1).reshape(R, D).astype(jnp.bfloat16)
    x = x + jnp.dot(o, wo_ref[...], preferred_element_type=jnp.float32) + bo_ref[...]

    # ---- feed-forward block: x = x + W2 . relu(W1 . LN2(x)) ----------------
    h = _layer_norm_2d(x, ln2w_ref[...], ln2b_ref[...]).astype(jnp.bfloat16)
    h = jnp.dot(h, w1_ref[...], preferred_element_type=jnp.float32) + b1_ref[...]
    h = jnp.maximum(h, 0.0).astype(jnp.bfloat16)      # ReLU (PyTorch default activation)
    h = jnp.dot(h, w2_ref[...], preferred_element_type=jnp.float32) + b2_ref[...]
    x = x + h
    x_sc[...] = x

    # ---- masked mean pooling, written only after the last layer ------------
    # NOTE: a fully padded sequence yields a uniform softmax over pad keys and
    # a zero-safe pooled vector via the clamp (PyTorch would produce NaN).
    @pl.when(layer == pl.num_programs(1) - 1)
    def _():
        x3 = x.reshape(Bt, S, D)
        summed = jnp.einsum("bqs,bsd->bqd", keep, x3,
                            preferred_element_type=jnp.float32)   # (Bt, 1, D) on MXU
        count = jnp.maximum(jnp.sum(keep, axis=-1, keepdims=True), 1.0)
        out_ref[...] = summed / count


PACK_ORDER = ("ln1w", "ln1b", "wqkv", "bqkv", "wo", "bo",
              "ln2w", "ln2b", "w1", "b1", "w2", "b2")


def pack_params(layers, num_heads):
    """Host-side repack: stack layers, fuse QKV, fold the attention scale."""
    L = len(layers)
    D = layers[0]["wq"].shape[0]
    hd = D // num_heads
    F = layers[0]["w1"].shape[1]
    scale = 1.0 / math.sqrt(hd)

    def stack(name):
        return jnp.stack([lyr[name] for lyr in layers])

    # fold 1/sqrt(hd) into the query projection (exact for power-of-two hd)
    wq = stack("wq").astype(jnp.float32) * scale
    bq = stack("bq").astype(jnp.float32) * scale
    wqkv = jnp.concatenate([wq,
                            stack("wk").astype(jnp.float32),
                            stack("wv").astype(jnp.float32)],
                           axis=-1).astype(jnp.bfloat16)               # (L, D, 3D)
    bqkv = jnp.concatenate([bq, stack("bk"), stack("bv")],
                           axis=-1).reshape(L, 1, 3 * D).astype(jnp.float32)

    packed = {
        "ln1w": stack("ln1w").reshape(L, 1, D).astype(jnp.float32),
        "ln1b": stack("ln1b").reshape(L, 1, D).astype(jnp.float32),
        "wqkv": wqkv,
        "bqkv": bqkv,
        "wo": stack("wo").astype(jnp.bfloat16),                        # (L, D, D)
        "bo": stack("bo").reshape(L, 1, D).astype(jnp.float32),
        "ln2w": stack("ln2w").reshape(L, 1, D).astype(jnp.float32),
        "ln2b": stack("ln2b").reshape(L, 1, D).astype(jnp.float32),
        "w1": stack("w1").astype(jnp.bfloat16),                        # (L, D, 4D)
        "b1": stack("b1").reshape(L, 1, F).astype(jnp.float32),
        "w2": stack("w2").astype(jnp.bfloat16),                        # (L, 4D, D)
        "b2": stack("b2").reshape(L, 1, D).astype(jnp.float32),
    }
    return [packed[k] for k in PACK_ORDER]


def _default_batch_tile(B):
    """Largest divisor of B giving >=2 grid steps (v7x: feed both TensorCores)."""
    for d in range(B // 2, 0, -1):
        if B % d == 0:
            return d
    return B


def run_encoder(x, keep, packed, *, num_layers, num_heads, batch_tile=None):
    B, S, D = x.shape
    Bt = _default_batch_tile(B) if batch_tile is None else batch_tile
    assert B % Bt == 0, "batch_tile must divide batch"
    grid = (B // Bt, num_layers)            # (parallel batch tiles, streamed layers)

    keep3 = keep.reshape(B, 1, S)

    # Per-layer weight blocks, streamed (and double-buffered) along the layer axis.
    weight_specs = [pl.BlockSpec((None,) + tuple(p.shape[1:]), lambda b, l: (l, 0, 0))
                    for p in packed]

    out = pl.pallas_call(
        partial(encoder_kernel, num_heads=num_heads),
        out_shape=jax.ShapeDtypeStruct((B, 1, D), jnp.float32),
        grid=grid,
        in_specs=[pl.BlockSpec((Bt, S, D), lambda b, l: (b, 0, 0)),
                  pl.BlockSpec((Bt, 1, S), lambda b, l: (b, 0, 0))] + weight_specs,
        out_specs=pl.BlockSpec((Bt, 1, D), lambda b, l: (b, 0, 0)),
        scratch_shapes=[pltpu.VMEM((Bt * S, D), jnp.float32)],   # resident activations
        compiler_params=pltpu.CompilerParams(
            dimension_semantics=("parallel", "arbitrary"),
            vmem_limit_bytes=48 * 1024 * 1024,   # > v5e/v6e scoped defaults, < v7x 64 MiB
        ),
    )(x, keep3, *packed)
    return out.reshape(B, D)


def init_params(key, vocab, D, num_heads, num_layers, max_seq_length, ffn_mult=4):
    F = ffn_mult * D
    keys = jax.random.split(key, 2 + num_layers)

    def normal(k, shape, scale=0.05):
        return (scale * jax.random.normal(k, shape)).astype(jnp.float32)

    params = {
        "token_embedding": normal(keys[0], (vocab, D), 0.1),
        "position_embedding": normal(keys[1], (max_seq_length + 1, D), 0.1),
        "layers": [],
    }
    for l in range(num_layers):
        lk = jax.random.split(keys[2 + l], 16)
        layer = {
            "ln1w": 1.0 + normal(lk[0], (D,), 0.1),
            "ln1b": normal(lk[1], (D,), 0.05),
            "ln2w": 1.0 + normal(lk[2], (D,), 0.1),
            "ln2b": normal(lk[3], (D,), 0.05),
            # projection weights stored transposed for x @ W, in bf16 (MXU-native)
            "wq": normal(lk[4], (D, D)).astype(jnp.bfloat16),
            "wk": normal(lk[5], (D, D)).astype(jnp.bfloat16),
            "wv": normal(lk[6], (D, D)).astype(jnp.bfloat16),
            "bq": normal(lk[7], (D,), 0.02),
            "bk": normal(lk[8], (D,), 0.02),
            "bv": normal(lk[9], (D,), 0.02),
            "wo": normal(lk[10], (D, D)).astype(jnp.bfloat16),
            "bo": normal(lk[11], (D,), 0.02),
            "w1": normal(lk[12], (D, F)).astype(jnp.bfloat16),
            "b1": normal(lk[13], (F,), 0.02),
            "w2": normal(lk[14], (F, D)).astype(jnp.bfloat16),
            "b2": normal(lk[15], (D,), 0.02),
        }
        params["layers"].append(layer)
    return params


def _embed(tokens, padding_mask, params, pad_token_id):
    B, S = tokens.shape
    is_pad = tokens == pad_token_id
    safe_tokens = jnp.where(is_pad, 0, tokens)
    tok_emb = params["token_embedding"][safe_tokens]
    tok_emb = jnp.where(is_pad[..., None], 0.0, tok_emb)       # token_embeds[pad] = 0
    positions = jnp.arange(S)[None, :]
    pos_emb = params["position_embedding"][positions]           # (1, S, D)
    x = (tok_emb + pos_emb).astype(jnp.float32)
    # TODO(synk): nn.Dropout is identity in eval mode; no stochastic dropout applied.
    if padding_mask is None:
        padding_mask = jnp.zeros((B, S), dtype=bool)
    return x, padding_mask


def encoder_forward(tokens, padding_mask, params, *, num_heads, pad_token_id,
                    batch_tile=None):
    x, padding_mask = _embed(tokens, padding_mask, params, pad_token_id)
    keep = (~padding_mask).astype(jnp.float32)                  # (B, S)
    packed = pack_params(params["layers"], num_heads)
    return run_encoder(x, keep, packed,
                       num_layers=len(params["layers"]),
                       num_heads=num_heads, batch_tile=batch_tile)


def reference_forward(tokens, padding_mask, params, *, num_heads, pad_token_id):
    """Pure-JAX reference mirroring the PyTorch forward (eval mode), f32 math."""
    x, padding_mask = _embed(tokens, padding_mask, params, pad_token_id)
    B, S, D = x.shape
    hd = D // num_heads
    addmask = jnp.where(padding_mask, NEG_INF, 0.0)[:, None, None, :]   # (B,1,1,S)

    def ln(t, w, b):
        mu = jnp.mean(t, axis=-1, keepdims=True)
        var = jnp.mean((t - mu) ** 2, axis=-1, keepdims=True)
        return (t - mu) * jax.lax.rsqrt(var + LN_EPS) * w + b

    f32 = lambda a: jnp.asarray(a, jnp.float32)
    for lyr in params["layers"]:
        h = ln(x, f32(lyr["ln1w"]), f32(lyr["ln1b"]))
        q = h @ f32(lyr["wq"]) + f32(lyr["bq"])
        k = h @ f32(lyr["wk"]) + f32(lyr["bk"])
        v = h @ f32(lyr["wv"]) + f32(lyr["bv"])
        sh = lambda t: t.reshape(B, S, num_heads, hd).transpose(0, 2, 1, 3)
        qh, kh, vh = sh(q), sh(k), sh(v)
        s = jnp.einsum("bhqd,bhkd->bhqk", qh, kh) / math.sqrt(hd) + addmask
        p = jax.nn.softmax(s, axis=-1)
        o = jnp.einsum("bhqk,bhkd->bhqd", p, vh).transpose(0, 2, 1, 3).reshape(B, S, D)
        x = x + (o @ f32(lyr["wo"]) + f32(lyr["bo"]))
        h = ln(x, f32(lyr["ln2w"]), f32(lyr["ln2b"]))
        x = x + (jnp.maximum(h @ f32(lyr["w1"]) + f32(lyr["b1"]), 0.0)
                 @ f32(lyr["w2"]) + f32(lyr["b2"]))

    keep = (~padding_mask).astype(jnp.float32)[..., None]
    summed = jnp.sum(x * keep, axis=1)
    count = jnp.maximum(jnp.sum(keep, axis=1), 1.0)
    return summed / count


if __name__ == "__main__":
    VOCAB, D, HEADS, LAYERS, MAXLEN, PAD = 50, 32, 2, 2, 16, 0
    B, S = 2, 8

    key = jax.random.PRNGKey(0)
    k_tok, k_par = jax.random.split(key)
    tokens = jax.random.randint(k_tok, (B, S), 1, VOCAB)
    tokens = tokens.at[1, S - 3:].set(PAD)      # pad the tail of sequence 1
    padding_mask = tokens == PAD                # True where padded (PyTorch convention)

    params = init_params(k_par, VOCAB, D, HEADS, LAYERS, MAXLEN)

    emb = encoder_forward(tokens, padding_mask, params,
                          num_heads=HEADS, pad_token_id=PAD)
    emb = jax.block_until_ready(emb)

    ref = reference_forward(tokens, padding_mask, params,
                            num_heads=HEADS, pad_token_id=PAD)
    assert emb.shape == (B, D)
    np.testing.assert_allclose(np.asarray(emb), np.asarray(ref), rtol=2e-2, atol=2e-2)
    print("KERNEL_OK")
</pallas_src>

<mosaic_0001>
module attributes {stable_mosaic.version = 11 : i64} {
  func.func @encoder_kernel(%arg0: i32, %arg1: i32, %arg2: memref<1x8x32xf32, #tpu.memory_space<vmem>>, %arg3: memref<1x1x8xf32, #tpu.memory_space<vmem>>, %arg4: memref<1x1x32xf32, #tpu.memory_space<vmem>>, %arg5: memref<1x1x32xf32, #tpu.memory_space<vmem>>, %arg6: memref<1x32x96xbf16, #tpu.memory_space<vmem>>, %arg7: memref<1x1x96xf32, #tpu.memory_space<vmem>>, %arg8: memref<1x32x32xbf16, #tpu.memory_space<vmem>>, %arg9: memref<1x1x32xf32, #tpu.memory_space<vmem>>, %arg10: memref<1x1x32xf32, #tpu.memory_space<vmem>>, %arg11: memref<1x1x32xf32, #tpu.memory_space<vmem>>, %arg12: memref<1x32x128xbf16, #tpu.memory_space<vmem>>, %arg13: memref<1x1x128xf32, #tpu.memory_space<vmem>>, %arg14: memref<1x128x32xbf16, #tpu.memory_space<vmem>>, %arg15: memref<1x1x32xf32, #tpu.memory_space<vmem>>, %arg16: memref<1x1x32xf32, #tpu.memory_space<vmem>>, %arg17: memref<8x32xf32, #tpu.memory_space<vmem>>) attributes {dimension_semantics = [#tpu.dimension_semantics<parallel>, #tpu.dimension_semantics<arbitrary>], iteration_bounds = array<i64: 2, 2>, scalar_prefetch = 0 : i64, scratch_operands = 1 : i64, tpu.core_type = #tpu.core_type<tc>, window_params = [{transform_indices = @transform_0, window_bounds = array<i64: 1, 8, 32>}, {transform_indices = @transform_1, window_bounds = array<i64: 1, 1, 8>}, {transform_indices = @transform_2, window_bounds = array<i64: 1, 1, 32>}, {transform_indices = @transform_3, window_bounds = array<i64: 1, 1, 32>}, {transform_indices = @transform_4, window_bounds = array<i64: 1, 32, 96>}, {transform_indices = @transform_5, window_bounds = array<i64: 1, 1, 96>}, {transform_indices = @transform_6, window_bounds = array<i64: 1, 32, 32>}, {transform_indices = @transform_7, window_bounds = array<i64: 1, 1, 32>}, {transform_indices = @transform_8, window_bounds = array<i64: 1, 1, 32>}, {transform_indices = @transform_9, window_bounds = array<i64: 1, 1, 32>}, {transform_indices = @transform_10, window_bounds = array<i64: 1, 32, 128>}, {transform_indices = @transform_11, window_bounds = array<i64: 1, 1, 128>}, {transform_indices = @transform_12, window_bounds = array<i64: 1, 128, 32>}, {transform_indices = @transform_13, window_bounds = array<i64: 1, 1, 32>}, {transform_indices = @transform_14, window_bounds = array<i64: 1, 1, 32>}]} {
    %c0_i32 = arith.constant 0 : i32
    %0 = arith.cmpi eq, %arg1, %c0_i32 : i32
    %1 = arith.extui %0 : i1 to i32
    %c0_i32_0 = arith.constant 0 : i32
    %2 = arith.cmpi ne, %1, %c0_i32_0 : i32
    scf.if %2 {
      %c0_68 = arith.constant 0 : index
      %c0_69 = arith.constant 0 : index
      %c0_70 = arith.constant 0 : index
      %151 = vector.load %arg2[%c0_68, %c0_69, %c0_70] : memref<1x8x32xf32, #tpu.memory_space<vmem>>, vector<1x8x32xf32>
      %152 = vector.shape_cast %151 : vector<1x8x32xf32> to vector<8x32xf32>
      %c0_71 = arith.constant 0 : index
      %c0_72 = arith.constant 0 : index
      %153 = vector.load %arg17[%c0_71, %c0_72] : memref<8x32xf32, #tpu.memory_space<vmem>>, vector<8x32xf32>
      tpu.vector_store %arg17[%c0_71, %c0_72], %152 {strides = array<i32>} : memref<8x32xf32, #tpu.memory_space<vmem>>, vector<8x32xf32>,
    } else {
    }
    %c0 = arith.constant 0 : index
    %c0_1 = arith.constant 0 : index
    %c0_2 = arith.constant 0 : index
    %3 = vector.load %arg3[%c0, %c0_1, %c0_2] : memref<1x1x8xf32, #tpu.memory_space<vmem>>, vector<1x1x8xf32>
    %cst = arith.constant 1.000000e+00 : f32
    %4 = vector.broadcast %cst : f32 to vector<1x1x8xf32>
    %5 = arith.subf %4, %3 : vector<1x1x8xf32>
    %cst_3 = arith.constant -1.000000e+30 : f32
    %6 = vector.broadcast %cst_3 : f32 to vector<1x1x8xf32>
    %7 = arith.mulf %5, %6 : vector<1x1x8xf32>
    %c0_4 = arith.constant 0 : index
    %c0_5 = arith.constant 0 : index
    %8 = vector.load %arg17[%c0_4, %c0_5] : memref<8x32xf32, #tpu.memory_space<vmem>>, vector<8x32xf32>
    %c0_6 = arith.constant 0 : index
    %c0_7 = arith.constant 0 : index
    %c0_8 = arith.constant 0 : index
    %9 = vector.load %arg4[%c0_6, %c0_7, %c0_8] : memref<1x1x32xf32, #tpu.memory_space<vmem>>, vector<1x1x32xf32>
    %10 = vector.shape_cast %9 : vector<1x1x32xf32> to vector<1x32xf32>
    %c0_9 = arith.constant 0 : index
    %c0_10 = arith.constant 0 : index
    %c0_11 = arith.constant 0 : index
    %11 = vector.load %arg5[%c0_9, %c0_10, %c0_11] : memref<1x1x32xf32, #tpu.memory_space<vmem>>, vector<1x1x32xf32>
    %12 = vector.shape_cast %11 : vector<1x1x32xf32> to vector<1x32xf32>
    %cst_12 = arith.constant dense<0.000000e+00> : vector<8xf32>
    %13 = vector.multi_reduction <add>, %8, %cst_12 [1] : vector<8x32xf32> to vector<8xf32>
    %14 = vector.shape_cast %13 : vector<8xf32> to vector<8x1xf32>
    %cst_13 = arith.constant 3.200000e+01 : f32
    %15 = vector.broadcast %cst_13 : f32 to vector<8x1xf32>
    %16 = arith.divf %14, %15 : vector<8x1xf32>
    %17 = vector.broadcast %16 : vector<8x1xf32> to vector<8x32xf32>
    %18 = arith.subf %8, %17 : vector<8x32xf32>
    %19 = arith.mulf %18, %18 : vector<8x32xf32>
    %cst_14 = arith.constant dense<0.000000e+00> : vector<8xf32>
    %20 = vector.multi_reduction <add>, %19, %cst_14 [1] : vector<8x32xf32> to vector<8xf32>
    %21 = vector.shape_cast %20 : vector<8xf32> to vector<8x1xf32>
    %cst_15 = arith.constant 3.200000e+01 : f32
    %22 = vector.broadcast %cst_15 : f32 to vector<8x1xf32>
    %23 = arith.divf %21, %22 : vector<8x1xf32>
    %24 = vector.broadcast %16 : vector<8x1xf32> to vector<8x32xf32>
    %25 = arith.subf %8, %24 : vector<8x32xf32>
    %cst_16 = arith.constant 9.99999974E-6 : f32
    %26 = vector.broadcast %cst_16 : f32 to vector<8x1xf32>
    %27 = arith.addf %23, %26 : vector<8x1xf32>
    %28 = math.rsqrt %27 : vector<8x1xf32>
    %29 = vector.broadcast %28 : vector<8x1xf32> to vector<8x32xf32>
    %30 = arith.mulf %25, %29 : vector<8x32xf32>
    %31 = vector.broadcast %10 : vector<1x32xf32> to vector<8x32xf32>
    %32 = arith.mulf %30, %31 : vector<8x32xf32>
    %33 = vector.broadcast %12 : vector<1x32xf32> to vector<8x32xf32>
    %34 = arith.addf %32, %33 : vector<8x32xf32>
    %35 = arith.truncf %34 : vector<8x32xf32> to vector<8x32xbf16>
    %c0_17 = arith.constant 0 : index
    %c0_18 = arith.constant 0 : index
    %c0_19 = arith.constant 0 : index
    %36 = vector.load %arg6[%c0_17, %c0_18, %c0_19] : memref<1x32x96xbf16, #tpu.memory_space<vmem>>, vector<1x32x96xbf16>
    %37 = vector.shape_cast %36 : vector<1x32x96xbf16> to vector<32x96xbf16>
    %cst_20 = arith.constant dense<0.000000e+00> : vector<8x96xf32>
    %38 = tpu.matmul %35, %37, %cst_20 {dimension_numbers = #tpu.dot_dimension_numbers<[1], [0], [0], [1], [0, 0, 1, 1], [], []>} : vector<8x32xbf16>, vector<32x96xbf16>, vector<8x96xf32> -> vector<8x96xf32>
    %c0_21 = arith.constant 0 : index
    %c0_22 = arith.constant 0 : index
    %c0_23 = arith.constant 0 : index
    %39 = vector.load %arg7[%c0_21, %c0_22, %c0_23] : memref<1x1x96xf32, #tpu.memory_space<vmem>>, vector<1x1x96xf32>
    %40 = vector.shape_cast %39 : vector<1x1x96xf32> to vector<1x96xf32>
    %41 = vector.broadcast %40 : vector<1x96xf32> to vector<8x96xf32>
    %42 = arith.addf %38, %41 : vector<8x96xf32>
    %43 = vector.extract_strided_slice %42 {offsets = [0, 0], sizes = [8, 16], strides = [1, 1]} : vector<8x96xf32> to vector<8x16xf32>
    %44 = vector.shape_cast %43 : vector<8x16xf32> to vector<1x8x16xf32>
    %45 = arith.truncf %44 : vector<1x8x16xf32> to vector<1x8x16xbf16>
    %46 = vector.extract_strided_slice %42 {offsets = [0, 32], sizes = [8, 16], strides = [1, 1]} : vector<8x96xf32> to vector<8x16xf32>
    %47 = vector.shape_cast %46 : vector<8x16xf32> to vector<1x8x16xf32>
    %48 = arith.truncf %47 : vector<1x8x16xf32> to vector<1x8x16xbf16>
    %49 = vector.extract_strided_slice %42 {offsets = [0, 64], sizes = [8, 16], strides = [1, 1]} : vector<8x96xf32> to vector<8x16xf32>
    %50 = vector.shape_cast %49 : vector<8x16xf32> to vector<1x8x16xf32>
    %51 = arith.truncf %50 : vector<1x8x16xf32> to vector<1x8x16xbf16>
    "tpu.trace_start"() <{level = 10 : i32, message = "bqd,bkd->bqk"}> : () -> ()
    %cst_24 = arith.constant dense<0.000000e+00> : vector<1x8x8xf32>
    %52 = tpu.matmul %45, %48, %cst_24 {dimension_numbers = #tpu.dot_dimension_numbers<[2], [2], [1], [1], [0, 0, 0, 1, 1, 1], [0], [0]>} : vector<1x8x16xbf16>, vector<1x8x16xbf16>, vector<1x8x8xf32> -> vector<1x8x8xf32>
    "tpu.trace_stop"() : () -> ()
    %53 = vector.broadcast %7 : vector<1x1x8xf32> to vector<1x8x8xf32>
    %54 = arith.addf %52, %53 : vector<1x8x8xf32>
    %cst_25 = arith.constant dense<0xFF800000> : vector<1x8xf32>
    %55 = vector.multi_reduction <maximumf>, %54, %cst_25 [2] : vector<1x8x8xf32> to vector<1x8xf32>
    %56 = vector.shape_cast %55 : vector<1x8xf32> to vector<1x8x1xf32>
    %57 = vector.broadcast %56 : vector<1x8x1xf32> to vector<1x8x8xf32>
    %58 = arith.subf %54, %57 : vector<1x8x8xf32>
    %59 = math.exp %58 : vector<1x8x8xf32>
    %cst_26 = arith.constant dense<0.000000e+00> : vector<1x8xf32>
    %60 = vector.multi_reduction <add>, %59, %cst_26 [2] : vector<1x8x8xf32> to vector<1x8xf32>
    %61 = vector.shape_cast %60 : vector<1x8xf32> to vector<1x8x1xf32>
    %62 = tpu.reciprocal %61 {approx = true} : vector<1x8x1xf32> -> vector<1x8x1xf32>
    %63 = vector.broadcast %62 : vector<1x8x1xf32> to vector<1x8x8xf32>
    %64 = arith.mulf %59, %63 : vector<1x8x8xf32>
    %65 = arith.truncf %64 : vector<1x8x8xf32> to vector<1x8x8xbf16>
    "tpu.trace_start"() <{level = 10 : i32, message = "bqk,bkd->bqd"}> : () -> ()
    %cst_27 = arith.constant dense<0.000000e+00> : vector<1x8x16xf32>
    %66 = tpu.matmul %65, %51, %cst_27 {dimension_numbers = #tpu.dot_dimension_numbers<[2], [1], [1], [2], [0, 0, 0, 1, 1, 2], [0], [0]>} : vector<1x8x8xbf16>, vector<1x8x16xbf16>, vector<1x8x16xf32> -> vector<1x8x16xf32>
    "tpu.trace_stop"() : () -> ()
    %67 = vector.extract_strided_slice %42 {offsets = [0, 16], sizes = [8, 16], strides = [1, 1]} : vector<8x96xf32> to vector<8x16xf32>
    %68 = vector.shape_cast %67 : vector<8x16xf32> to vector<1x8x16xf32>
    %69 = arith.truncf %68 : vector<1x8x16xf32> to vector<1x8x16xbf16>
    %70 = vector.extract_strided_slice %42 {offsets = [0, 48], sizes = [8, 16], strides = [1, 1]} : vector<8x96xf32> to vector<8x16xf32>
    %71 = vector.shape_cast %70 : vector<8x16xf32> to vector<1x8x16xf32>
    %72 = arith.truncf %71 : vector<1x8x16xf32> to vector<1x8x16xbf16>
    %73 = vector.extract_strided_slice %42 {offsets = [0, 80], sizes = [8, 16], strides = [1, 1]} : vector<8x96xf32> to vector<8x16xf32>
    %74 = vector.shape_cast %73 : vector<8x16xf32> to vector<1x8x16xf32>
    %75 = arith.truncf %74 : vector<1x8x16xf32> to vector<1x8x16xbf16>
    "tpu.trace_start"() <{level = 10 : i32, message = "bqd,bkd->bqk"}> : () -> ()
    %cst_28 = arith.constant dense<0.000000e+00> : vector<1x8x8xf32>
    %76 = tpu.matmul %69, %72, %cst_28 {dimension_numbers = #tpu.dot_dimension_numbers<[2], [2], [1], [1], [0, 0, 0, 1, 1, 1], [0], [0]>} : vector<1x8x16xbf16>, vector<1x8x16xbf16>, vector<1x8x8xf32> -> vector<1x8x8xf32>
    "tpu.trace_stop"() : () -> ()
    %77 = vector.broadcast %7 : vector<1x1x8xf32> to vector<1x8x8xf32>
    %78 = arith.addf %76, %77 : vector<1x8x8xf32>
    %cst_29 = arith.constant dense<0xFF800000> : vector<1x8xf32>
    %79 = vector.multi_reduction <maximumf>, %78, %cst_29 [2] : vector<1x8x8xf32> to vector<1x8xf32>
    %80 = vector.shape_cast %79 : vector<1x8xf32> to vector<1x8x1xf32>
    %81 = vector.broadcast %80 : vector<1x8x1xf32> to vector<1x8x8xf32>
    %82 = arith.subf %78, %81 : vector<1x8x8xf32>
    %83 = math.exp %82 : vector<1x8x8xf32>
    %cst_30 = arith.constant dense<0.000000e+00> : vector<1x8xf32>
    %84 = vector.multi_reduction <add>, %83, %cst_30 [2] : vector<1x8x8xf32> to vector<1x8xf32>
    %85 = vector.shape_cast %84 : vector<1x8xf32> to vector<1x8x1xf32>
    %86 = tpu.reciprocal %85 {approx = true} : vector<1x8x1xf32> -> vector<1x8x1xf32>
    %87 = vector.broadcast %86 : vector<1x8x1xf32> to vector<1x8x8xf32>
    %88 = arith.mulf %83, %87 : vector<1x8x8xf32>
    %89 = arith.truncf %88 : vector<1x8x8xf32> to vector<1x8x8xbf16>
    "tpu.trace_start"() <{level = 10 : i32, message = "bqk,bkd->bqd"}> : () -> ()
    %cst_31 = arith.constant dense<0.000000e+00> : vector<1x8x16xf32>
    %90 = tpu.matmul %89, %75, %cst_31 {dimension_numbers = #tpu.dot_dimension_numbers<[2], [1], [1], [2], [0, 0, 0, 1, 1, 2], [0], [0]>} : vector<1x8x8xbf16>, vector<1x8x16xbf16>, vector<1x8x16xf32> -> vector<1x8x16xf32>
    "tpu.trace_stop"() : () -> ()
    %91 = tpu.concatenate %66, %90 in 2 : vector<1x8x16xf32>, vector<1x8x16xf32> -> vector<1x8x32xf32>
    %92 = vector.shape_cast %91 : vector<1x8x32xf32> to vector<8x32xf32>
    %93 = arith.truncf %92 : vector<8x32xf32> to vector<8x32xbf16>
    %c0_32 = arith.constant 0 : index
    %c0_33 = arith.constant 0 : index
    %c0_34 = arith.constant 0 : index
    %94 = vector.load %arg8[%c0_32, %c0_33, %c0_34] : memref<1x32x32xbf16, #tpu.memory_space<vmem>>, vector<1x32x32xbf16>
    %95 = vector.shape_cast %94 : vector<1x32x32xbf16> to vector<32x32xbf16>
    %cst_35 = arith.constant dense<0.000000e+00> : vector<8x32xf32>
    %96 = tpu.matmul %93, %95, %cst_35 {dimension_numbers = #tpu.dot_dimension_numbers<[1], [0], [0], [1], [0, 0, 1, 1], [], []>} : vector<8x32xbf16>, vector<32x32xbf16>, vector<8x32xf32> -> vector<8x32xf32>
    %97 = arith.addf %8, %96 : vector<8x32xf32>
    %c0_36 = arith.constant 0 : index
    %c0_37 = arith.constant 0 : index
    %c0_38 = arith.constant 0 : index
    %98 = vector.load %arg9[%c0_36, %c0_37, %c0_38] : memref<1x1x32xf32, #tpu.memory_space<vmem>>, vector<1x1x32xf32>
    %99 = vector.shape_cast %98 : vector<1x1x32xf32> to vector<1x32xf32>
    %100 = vector.broadcast %99 : vector<1x32xf32> to vector<8x32xf32>
    %101 = arith.addf %97, %100 : vector<8x32xf32>
    %c0_39 = arith.constant 0 : index
    %c0_40 = arith.constant 0 : index
    %c0_41 = arith.constant 0 : index
    %102 = vector.load %arg10[%c0_39, %c0_40, %c0_41] : memref<1x1x32xf32, #tpu.memory_space<vmem>>, vector<1x1x32xf32>
    %103 = vector.shape_cast %102 : vector<1x1x32xf32> to vector<1x32xf32>
    %c0_42 = arith.constant 0 : index
    %c0_43 = arith.constant 0 : index
    %c0_44 = arith.constant 0 : index
    %104 = vector.load %arg11[%c0_42, %c0_43, %c0_44] : memref<1x1x32xf32, #tpu.memory_space<vmem>>, vector<1x1x32xf32>
    %105 = vector.shape_cast %104 : vector<1x1x32xf32> to vector<1x32xf32>
    %cst_45 = arith.constant dense<0.000000e+00> : vector<8xf32>
    %106 = vector.multi_reduction <add>, %101, %cst_45 [1] : vector<8x32xf32> to vector<8xf32>
    %107 = vector.shape_cast %106 : vector<8xf32> to vector<8x1xf32>
    %cst_46 = arith.constant 3.200000e+01 : f32
    %108 = vector.broadcast %cst_46 : f32 to vector<8x1xf32>
    %109 = arith.divf %107, %108 : vector<8x1xf32>
    %110 = vector.broadcast %109 : vector<8x1xf32> to vector<8x32xf32>
    %111 = arith.subf %101, %110 : vector<8x32xf32>
    %112 = arith.mulf %111, %111 : vector<8x32xf32>
    %cst_47 = arith.constant dense<0.000000e+00> : vector<8xf32>
    %113 = vector.multi_reduction <add>, %112, %cst_47 [1] : vector<8x32xf32> to vector<8xf32>
    %114 = vector.shape_cast %113 : vector<8xf32> to vector<8x1xf32>
    %cst_48 = arith.constant 3.200000e+01 : f32
    %115 = vector.broadcast %cst_48 : f32 to vector<8x1xf32>
    %116 = arith.divf %114, %115 : vector<8x1xf32>
    %117 = vector.broadcast %109 : vector<8x1xf32> to vector<8x32xf32>
    %118 = arith.subf %101, %117 : vector<8x32xf32>
    %cst_49 = arith.constant 9.99999974E-6 : f32
    %119 = vector.broadcast %cst_49 : f32 to vector<8x1xf32>
    %120 = arith.addf %116, %119 : vector<8x1xf32>
    %121 = math.rsqrt %120 : vector<8x1xf32>
    %122 = vector.broadcast %121 : vector<8x1xf32> to vector<8x32xf32>
    %123 = arith.mulf %118, %122 : vector<8x32xf32>
    %124 = vector.broadcast %103 : vector<1x32xf32> to vector<8x32xf32>
    %125 = arith.mulf %123, %124 : vector<8x32xf32>
    %126 = vector.broadcast %105 : vector<1x32xf32> to vector<8x32xf32>
    %127 = arith.addf %125, %126 : vector<8x32xf32>
    %128 = arith.truncf %127 : vector<8x32xf32> to vector<8x32xbf16>
    %c0_50 = arith.constant 0 : index
    %c0_51 = arith.constant 0 : index
    %c0_52 = arith.constant 0 : index
    %129 = vector.load %arg12[%c0_50, %c0_51, %c0_52] : memref<1x32x128xbf16, #tpu.memory_space<vmem>>, vector<1x32x128xbf16>
    %130 = vector.shape_cast %129 : vector<1x32x128xbf16> to vector<32x128xbf16>
    %cst_53 = arith.constant dense<0.000000e+00> : vector<8x128xf32>
    %131 = tpu.matmul %128, %130, %cst_53 {dimension_numbers = #tpu.dot_dimension_numbers<[1], [0], [0], [1], [0, 0, 1, 1], [], []>} : vector<8x32xbf16>, vector<32x128xbf16>, vector<8x128xf32> -> vector<8x128xf32>
    %c0_54 = arith.constant 0 : index
    %c0_55 = arith.constant 0 : index
    %c0_56 = arith.constant 0 : index
    %132 = vector.load %arg13[%c0_54, %c0_55, %c0_56] : memref<1x1x128xf32, #tpu.memory_space<vmem>>, vector<1x1x128xf32>
    %133 = vector.shape_cast %132 : vector<1x1x128xf32> to vector<1x128xf32>
    %134 = vector.broadcast %133 : vector<1x128xf32> to vector<8x128xf32>
    %135 = arith.addf %131, %134 : vector<8x128xf32>
    %cst_57 = arith.constant 0.000000e+00 : f32
    %136 = vector.broadcast %cst_57 : f32 to vector<8x128xf32>
    %137 = arith.maximumf %135, %136 : vector<8x128xf32>
    %138 = arith.truncf %137 : vector<8x128xf32> to vector<8x128xbf16>
    %c0_58 = arith.constant 0 : index
    %c0_59 = arith.constant 0 : index
    %c0_60 = arith.constant 0 : index
    %139 = vector.load %arg14[%c0_58, %c0_59, %c0_60] : memref<1x128x32xbf16, #tpu.memory_space<vmem>>, vector<1x128x32xbf16>
    %140 = vector.shape_cast %139 : vector<1x128x32xbf16> to vector<128x32xbf16>
    %cst_61 = arith.constant dense<0.000000e+00> : vector<8x32xf32>
    %141 = tpu.matmul %138, %140, %cst_61 {dimension_numbers = #tpu.dot_dimension_numbers<[1], [0], [0], [1], [0, 0, 1, 1], [], []>} : vector<8x128xbf16>, vector<128x32xbf16>, vector<8x32xf32> -> vector<8x32xf32>
    %c0_62 = arith.constant 0 : index
    %c0_63 = arith.constant 0 : index
    %c0_64 = arith.constant 0 : index
    %142 = vector.load %arg15[%c0_62, %c0_63, %c0_64] : memref<1x1x32xf32, #tpu.memory_space<vmem>>, vector<1x1x32xf32>
    %143 = vector.shape_cast %142 : vector<1x1x32xf32> to vector<1x32xf32>
    %144 = vector.broadcast %143 : vector<1x32xf32> to vector<8x32xf32>
    %145 = arith.addf %141, %144 : vector<8x32xf32>
    %146 = arith.addf %101, %145 : vector<8x32xf32>
    %c0_65 = arith.constant 0 : index
    %c0_66 = arith.constant 0 : index
    %147 = vector.load %arg17[%c0_65, %c0_66] : memref<8x32xf32, #tpu.memory_space<vmem>>, vector<8x32xf32>
    tpu.vector_store %arg17[%c0_65, %c0_66], %146 {strides = array<i32>} : memref<8x32xf32, #tpu.memory_space<vmem>>, vector<8x32xf32>,
    %c1_i32 = arith.constant 1 : i32
    %148 = arith.cmpi eq, %arg1, %c1_i32 : i32
    %149 = arith.extui %148 : i1 to i32
    %c0_i32_67 = arith.constant 0 : i32
    %150 = arith.cmpi ne, %149, %c0_i32_67 : i32
    scf.if %150 {
      %151 = vector.shape_cast %146 : vector<8x32xf32> to vector<1x8x32xf32>
      "tpu.trace_start"() <{level = 10 : i32, message = "bqs,bsd->bqd"}> : () -> ()
      %cst_68 = arith.constant dense<0.000000e+00> : vector<1x1x32xf32>
      %152 = tpu.matmul %3, %151, %cst_68 {dimension_numbers = #tpu.dot_dimension_numbers<[2], [1], [1], [2], [0, 0, 0, 1, 1, 2], [0], [0]>} : vector<1x1x8xf32>, vector<1x8x32xf32>, vector<1x1x32xf32> -> vector<1x1x32xf32>
      "tpu.trace_stop"() : () -> ()
      %cst_69 = arith.constant dense<0.000000e+00> : vector<1x1xf32>
      %153 = vector.multi_reduction <add>, %3, %cst_69 [2] : vector<1x1x8xf32> to vector<1x1xf32>
      %154 = vector.shape_cast %153 : vector<1x1xf32> to vector<1x1x1xf32>
      %cst_70 = arith.constant 1.000000e+00 : f32
      %155 = vector.broadcast %cst_70 : f32 to vector<1x1x1xf32>
      %156 = arith.maximumf %154, %155 : vector<1x1x1xf32>
      %157 = vector.broadcast %156 : vector<1x1x1xf32> to vector<1x1x32xf32>
      %158 = arith.divf %152, %157 : vector<1x1x32xf32>
      %c0_71 = arith.constant 0 : index
      %c0_72 = arith.constant 0 : index
      %c0_73 = arith.constant 0 : index
      %159 = vector.load %arg16[%c0_71, %c0_72, %c0_73] : memref<1x1x32xf32, #tpu.memory_space<vmem>>, vector<1x1x32xf32>
      tpu.vector_store %arg16[%c0_71, %c0_72, %c0_73], %158 {strides = array<i32>} : memref<1x1x32xf32, #tpu.memory_space<vmem>>, vector<1x1x32xf32>,
    } else {
    }
    return
  }
  func.func @transform_0(%arg0: i32, %arg1: i32) -> (i32, i32, i32) {
    %c0_i32 = arith.constant 0 : i32
    %c0_i32_0 = arith.constant 0 : i32
    %c0_i32_1 = arith.constant 0 : i32
    return %arg0, %c0_i32, %c0_i32_0 : i32, i32, i32
  }
  func.func @transform_1(%arg0: i32, %arg1: i32) -> (i32, i32, i32) {
    %c0_i32 = arith.constant 0 : i32
    %c0_i32_0 = arith.constant 0 : i32
    %c0_i32_1 = arith.constant 0 : i32
    return %arg0, %c0_i32, %c0_i32_0 : i32, i32, i32
  }
  func.func @transform_2(%arg0: i32, %arg1: i32) -> (i32, i32, i32) {
    %c0_i32 = arith.constant 0 : i32
    %c0_i32_0 = arith.constant 0 : i32
    %c0_i32_1 = arith.constant 0 : i32
    return %arg1, %c0_i32, %c0_i32_0 : i32, i32, i32
  }
  func.func @transform_3(%arg0: i32, %arg1: i32) -> (i32, i32, i32) {
    %c0_i32 = arith.constant 0 : i32
    %c0_i32_0 = arith.constant 0 : i32
    %c0_i32_1 = arith.constant 0 : i32
    return %arg1, %c0_i32, %c0_i32_0 : i32, i32, i32
  }
  func.func @transform_4(%arg0: i32, %arg1: i32) -> (i32, i32, i32) {
    %c0_i32 = arith.constant 0 : i32
    %c0_i32_0 = arith.constant 0 : i32
    %c0_i32_1 = arith.constant 0 : i32
    return %arg1, %c0_i32, %c0_i32_0 : i32, i32, i32
  }
  func.func @transform_5(%arg0: i32, %arg1: i32) -> (i32, i32, i32) {
    %c0_i32 = arith.constant 0 : i32
    %c0_i32_0 = arith.constant 0 : i32
    %c0_i32_1 = arith.constant 0 : i32
    return %arg1, %c0_i32, %c0_i32_0 : i32, i32, i32
  }
  func.func @transform_6(%arg0: i32, %arg1: i32) -> (i32, i32, i32) {
    %c0_i32 = arith.constant 0 : i32
    %c0_i32_0 = arith.constant 0 : i32
    %c0_i32_1 = arith.constant 0 : i32
    return %arg1, %c0_i32, %c0_i32_0 : i32, i32, i32
  }
  func.func @transform_7(%arg0: i32, %arg1: i32) -> (i32, i32, i32) {
    %c0_i32 = arith.constant 0 : i32
    %c0_i32_0 = arith.constant 0 : i32
    %c0_i32_1 = arith.constant 0 : i32
    return %arg1, %c0_i32, %c0_i32_0 : i32, i32, i32
  }
  func.func @transform_8(%arg0: i32, %arg1: i32) -> (i32, i32, i32) {
    %c0_i32 = arith.constant 0 : i32
    %c0_i32_0 = arith.constant 0 : i32
    %c0_i32_1 = arith.constant 0 : i32
    return %arg1, %c0_i32, %c0_i32_0 : i32, i32, i32
  }
  func.func @transform_9(%arg0: i32, %arg1: i32) -> (i32, i32, i32) {
    %c0_i32 = arith.constant 0 : i32
    %c0_i32_0 = arith.constant 0 : i32
    %c0_i32_1 = arith.constant 0 : i32
    return %arg1, %c0_i32, %c0_i32_0 : i32, i32, i32
  }
  func.func @transform_10(%arg0: i32, %arg1: i32) -> (i32, i32, i32) {
    %c0_i32 = arith.constant 0 : i32
    %c0_i32_0 = arith.constant 0 : i32
    %c0_i32_1 = arith.constant 0 : i32
    return %arg1, %c0_i32, %c0_i32_0 : i32, i32, i32
  }
  func.func @transform_11(%arg0: i32, %arg1: i32) -> (i32, i32, i32) {
    %c0_i32 = arith.constant 0 : i32
    %c0_i32_0 = arith.constant 0 : i32
    %c0_i32_1 = arith.constant 0 : i32
    return %arg1, %c0_i32, %c0_i32_0 : i32, i32, i32
  }
  func.func @transform_12(%arg0: i32, %arg1: i32) -> (i32, i32, i32) {
    %c0_i32 = arith.constant 0 : i32
    %c0_i32_0 = arith.constant 0 : i32
    %c0_i32_1 = arith.constant 0 : i32
    return %arg1, %c0_i32, %c0_i32_0 : i32, i32, i32
  }
  func.func @transform_13(%arg0: i32, %arg1: i32) -> (i32, i32, i32) {
    %c0_i32 = arith.constant 0 : i32
    %c0_i32_0 = arith.constant 0 : i32
    %c0_i32_1 = arith.constant 0 : i32
    return %arg1, %c0_i32, %c0_i32_0 : i32, i32, i32
  }
  func.func @transform_14(%arg0: i32, %arg1: i32) -> (i32, i32, i32) {
    %c0_i32 = arith.constant 0 : i32
    %c0_i32_0 = arith.constant 0 : i32
    %c0_i32_1 = arith.constant 0 : i32
    return %arg0, %c0_i32, %c0_i32_0 : i32, i32, i32
  }
}

</mosaic_0001>

<bundles_post_ra>
// kernel: tpu_custom_call.1
= control target key start
LH: loop header
LB: loop body
LE: loop exit
PB: predicated region body
PF: predicated region fallthrough
CT: control target
= control target key end

     0   :  { %s2013_s0 = inlined_call_operand.vmem [shape: f32[2,8,32], index: 0, kind: input, shape index: {}]   ;;  %s2014_s1 = inlined_call_operand.vmem [shape: f32[2,1,8], index: 1, kind: input, shape index: {}]   ;;  %s2015_s2 = inlined_call_operand.vmem [shape: f32[2,1,32], index: 2, kind: input, shape index: {}]   ;;  %s2016_s3 = inlined_call_operand.vmem [shape: f32[2,1,32], index: 3, kind: input, shape index: {}]   ;;  %s2017_s4 = inlined_call_operand.vmem [shape: bf16[2,32,96], index: 4, kind: input, shape index: {}]   ;;  %s2018_s5 = inlined_call_operand.vmem [shape: f32[2,1,96], index: 5, kind: input, shape index: {}]   ;;  %s2019_s6 = inlined_call_operand.vmem [shape: bf16[2,32,32], index: 6, kind: input, shape index: {}]   ;;  %s2020_s7 = inlined_call_operand.vmem [shape: f32[2,1,32], index: 7, kind: input, shape index: {}]   ;;  %s2021_s8 = inlined_call_operand.vmem [shape: f32[2,1,32], index: 8, kind: input, shape index: {}]   ;;  %s2022_s9 = inlined_call_operand.vmem [shape: f32[2,1,32], index: 9, kind: input, shape index: {}]   ;;  %s2023_s10 = inlined_call_operand.vmem [shape: bf16[2,32,128], index: 10, kind: input, shape index: {}]   ;;  %s2024_s11 = inlined_call_operand.vmem [shape: f32[2,1,128], index: 11, kind: input, shape index: {}]   ;;  %s2025_s12 = inlined_call_operand.vmem [shape: bf16[2,128,32], index: 12, kind: input, shape index: {}]   ;;  %s2026_s13 = inlined_call_operand.vmem [shape: f32[2,1,32], index: 13, kind: input, shape index: {}]   ;;  %s2027_s14 = inlined_call_operand.hbm [shape: f32[2,1,32], index: 14, kind: output, shape index: {}]  }
   0x1   :  { %2042 = sst [smem:[#allocation19_spill]] %s2013_s0 }
   0x2   :  { %2043 = sst [smem:[#allocation20_spill]] %s2017_s4 }
   0x3   :  { %2044 = sst [smem:[#allocation21_spill]] %s2019_s6 }
   0x4   :  { %2045 = sst [smem:[#allocation22_spill]] %s2020_s7 }
   0x5   :  { %2046 = sst [smem:[#allocation23_spill]] %s2021_s8 }
   0x6   :  { %2047 = sst [smem:[#allocation24_spill]] %s2024_s11 }
   0x7   :  { %2048 = sst [smem:[#allocation25_spill]] %s2025_s12 }
   0x8   :  { %2049 = sst [smem:[#allocation26_spill]] %s2026_s13 }
   0x9   :  { %2050 = sst [smem:[#allocation27_spill]] %s2027_s14 }
   0xa   :  { %19 = vsyncpa [#allocation4], 0 }
   0xb   :  { %21 = vsyncpa [#allocation4 + $0x1], 0  ;;  %s1724_s29 = smov 0   ;;  %s1726_s30 = smov 0  }
   0xc   :  { %s1728_s15 = smov 0   ;;  %s1730_s16 = smov 0  }
   0xd   :  { %s1732_s17 = smov 0   ;;  %s1734_s18 = smov 0  }
   0xe   :  { %s1736_s19 = smov 0   ;;  %s1738_s20 = smov 0  }
   0xf LB: > { %2051 = sst [smem:[#allocation6_spill]] %s1612_s29  ;;  %s1344_s21 = sadd.s32 4294967295, %s1640_s20   ;;  %s1640_s20 = sphi %s1738_s20, %s27_s20   ;;  %s1636_s19 = sphi %s1736_s19, %s2100_s19   ;;  %s1632_s18 = sphi %s1734_s18, %s2099_s18   ;;  %s1628_s17 = sphi %s1732_s17, %s2098_s17   ;;  %s1624_s16 = sphi %s1730_s16, %s2097_s16   ;;  %s1620_s15 = sphi %s1728_s15, %s2096_s15   ;;  %s1616_s30 = sphi %s1726_s30, %s2102_s30   ;;  %s1612_s29 = sphi %s1724_s29, %s2101_s29  }
  0x10   : > { %2052 = sst [smem:[#allocation7_spill]] %s1620_s15  ;;  %s1345_s22 = sadd.s32 4294967294, %s1640_s20  }
  0x11   : > { %2053 = sst [smem:[#allocation8_spill]] %s1624_s16  ;;  %s36_s23 = sadd.s32 1, %s1632_s18 }
  0x12   : > { %2054 = sst [smem:[#allocation9_spill]] %s1628_s17  ;;  %p37_p0 = scmp.ge.s32.totalorder %s36_s23, 2 }
  0x13   : > { %2055 = sst [smem:[#allocation10_spill]] %s1632_s18  ;;  %s39_s24 = sadd.s32 1, %s1636_s19 }
  0x14   : > { %2056 = sst [smem:[#allocation11_spill]] %s1636_s19  ;;  %p420_p1 = scmp.ne.s32.totalorder %s1620_s15, %s1616_s30 }
  0x15   : > { %2057 = sst [smem:[#allocation12_spill]] %s1640_s20  ;;  %p421_p2 = scmp.eq.s32.totalorder %s1344_s21, 3 }
  0x16   : > { %s2104_s23 = smov (%p37_p0, %s36_s23), 0  ;;  %s2106_s24 = smov (!%p37_p0, %s39_s24), %s1636_s19 }
  0x17   : > { %2058 = sst [smem:[#allocation13_spill]] %s2104_s23  ;;  %p1773_p3 = por %p421_p2, %p420_p1 }
  0x18   : > { %p426_p4 = scmp.ne.s32.totalorder %s1616_s30, %s1612_s29  ;;  %p41_p5 = scmp.ge.s32.totalorder %s2106_s24, 2 }
  0x19   : > { %s2059_s25 = scalar_select %p1773_p3, 1, 0 }
  0x1a   : > { %p427_p6 = scmp.eq.s32.totalorder %s1345_s22, 3  ;;  %p1348_p7 = scmp.ge.s32.totalorder %s1640_s20, 1 }
  0x1b   : > { %2060 = sst [smem:[#allocation14_spill]] %s2059_s25  ;;  %p538_p8 = scmp.lt.s32.totalorder %s1640_s20, 5 }
  0x1c   : > { %s2108_s24 = smov (%p41_p5, %s2106_s24), 0  ;;  %p1783_p9 = por %p427_p6, %p426_p4 }
  0x1d   : > { %2061 = sst [smem:[#allocation15_spill]] %s2108_s24  ;;  %p539_p10 = pnand %p1348_p7, %p538_p8 }
  0x1e   : > { %s2062_s26 = scalar_select %p1783_p9, 1, 0 }
  0x1f   : > { %s407_s27 = ssub.s32 %s1636_s19, %s2108_s24  ;;  %s410_s28 = sadd.s32 1, %s1620_s15 }
  0x20   : > { %2063 = sst [smem:[#allocation16_spill]] %s2062_s26  ;;  %p408_p11 = scmp.eq.s32.totalorder %s407_s27, 0 }
  0x21   : > { %542 = sbr.rel (%p539_p10) target bundleno = 2471 (0x9a7), region = 76 }
  0x22   : > { %s1791_s21 = scalar_select %p408_p11, %s1620_s15, %s410_s28  }
  0x24   : > { %2064 = sst [smem:[#allocation17_spill]] %s1791_s21 }
  0x26   : > { %p629_p12 = scmp.lt.s32.totalorder %s1628_s17, 1  ;;  %p636_p13 = scmp.lt.s32.totalorder %s1624_s16, 1 }
  0x27   : > { %s2065_s0 = sld [smem:[#allocation19_spill]]  ;;  %s2074_s12 = sand.u32 1, %s1616_s30  }
  0x28   : > { %s1797_s23 = scalar_select %p629_p12, %s1628_s17, 1 }
  0x29   : > { %s1800_s18 = scalar_select %p636_p13, %s1624_s16, 1 }
  0x2a   : > { %s1349_s27 = sshll.u32 %s1797_s23, 3  ;;  %s2066_s4 = sld [smem:[#allocation20_spill]] }
  0x2b   : > { %s1426_s16 = sshll.u32 %s1800_s18, 4  ;;  %s2067_s6 = sld [smem:[#allocation21_spill]] }
  0x2c   : > { %s1848_s28 = scalar_lea.vmem %s2023_s10, %s1426_s16  ;;  %s2071_s19 = sld [smem:[#allocation24_spill]] }
  0x2d   : > { %s632_s15 = scalar_lea.vmem %s2065_s0, %s1349_s27  ;;  %s663_s0 = scalar_lea.vmem %s2022_s9, %s1800_s18 }
  0x2e   : > { %s2072_s14 = sld [smem:[#allocation26_spill]]  ;;  %s1866_s13 = scalar_lea.vmem [#allocation3], %s2074_s12 }
  0x2f   : > { %s2073_s20 = sld [smem:[#allocation25_spill]] }
  0x30   : > { %s1822_s11 = scalar_lea.vmem %s2066_s4, %s1426_s16  ;;  %s2075_s4 = sld [smem:[#allocation8_spill]] }
  0x31   : > { %s1831_s24 = scalar_lea.vmem %s2067_s6, %s1426_s16 }
  0x32   : > { %2068 = sst [smem:[#allocation18_spill]] %s1831_s24  ;;  %s671_s6 = scalar_lea.vmem %s2071_s19, %s1800_s18 }
  0x33   : > { %s1429_s24 = sshll.u32 %s1800_s18, 6 }
  0x34   : > { %s679_s7 = scalar_lea.vmem %s2072_s14, %s1800_s18 }
  0x35   : > { %s1862_s8 = scalar_lea.vmem %s2073_s20, %s1429_s24 }
  0x36   : > { %p1358_p0 = scmp.ne.s32.totalorder %s2075_s4, 0 }
  0x38   : > { %684 = sbr.rel (%p1358_p0) target bundleno = 63 (0x3f), region = 80 }
  0x3d   : > { %v685_v0 = vld [vmem:[%s632_s15] sm:$0xff]  ;;  %vm686_vm0 = vcmask 261120  }
  0x3e   : > { %687 = vst.msk [vmem:[#allocation2] sm:$0xff] %vm686_vm0, %v685_v0 }
  0x3f PF: > { %vm694_vm1 = vcmask 261120   ;;  %v1642_v3 = vmov 32.0   ;;  %v1431_v15 = vld [vmem:[%s1822_s11 + $0x8] sm:$0xff]  ;;  %v1430_v16 = vld [vmem:[%s1822_s11] sm:$0xff]  ;;  %s2076_s11 = scalar_lea.vmem %s2015_s2, %s1800_s18  ;;  %s2077_s19 = scalar_lea.vmem %s2016_s3, %s1800_s18  ;;  %vm816_vm6 = vcmask 1043456   ;;  %vm778_vm7 = vcmask 130048  }
  0x40   : > { %1530 = vrcp.f32 %v1642_v3  ;;  %762 = vmatpush.bf16.msra.mxu0 %v1431_v15  ;;  %v1522_v26 = vld [vmem:[%s2076_s11] ss:$0 sm:$0xff]  ;;  %s2078_s21 = scalar_lea.vmem %s2018_s5, %s1800_s18  ;;  %s1643_s27 = smov 80   ;;  %vm798_vm8 = vcmask 64512  }
  0x41   : > { %v1523_v29 = vld [vmem:[%s2077_s19] ss:$0 sm:$0xff]  ;;  %s1644_s29 = smov 64   ;;  %s1645_s26 = smov 96  }
  0x42   : > { %v1524_v33 = vld [vmem:[%s2078_s21] ss:$0 sm:$0xff]  ;;  %s2079_s12 = scalar_lea.vmem %s2014_s1, %s1797_s23  ;;  %s1646_s4 = smov 48  }
  0x43   : > { %v1906_v46 = vld [vmem:[%s2079_s12] sm:$0x1]  ;;  %s1647_s23 = smov 112   ;;  %s2080_s15 = sld [smem:[#allocation18_spill]] }
  0x44   : > { %763 = vmatpush.bf16.msra.mxu0 %v1430_v16  ;;  %v689_v47 = vsub.f32 1.0, %v1906_v46  ;;  %s1648_s16 = smov 16   ;;  %s2081_s24 = sld [smem:[#allocation22_spill]] }
  0x45   : > { %v1869_v1 = vld [vmem:[#allocation2] sm:$0xff]  ;;  %s2083_s22 = sld [smem:[#allocation23_spill]] }
  0x46   : > { %v695_v2 = vsel %vm694_vm1, %v1869_v1, 0.0  ;;  %v1531_v4 = vpop.eup %1530  ;;  %v690_v48 = vmul.f32 -1e+30, %v689_v47 }
  0x47   : > { %696 = vadd.xlane.f32.xlu0 %v695_v2  ;;  %v699_v5 = vmul.f32 32.0, %v1531_v4  ;;  %vm703_vm2 = vweird.f32 %v1531_v4 }
  0x48   : > { %v771_v49 = vperm.slane %v690_v48, 0  ;;  %v1439_v48 = vld [vmem:[%s1862_s8 + $0x18] sm:$0xff] }
  0x49   : > { %v700_v6 = vsub.f32 1.0, %v699_v5 }
  0x4a   : > { %s2082_s19 = scalar_lea.vmem %s2081_s24, %s1800_s18 }
  0x4b   : > { %v701_v7 = vmul.f32 %v1531_v4, %v700_v6  ;;  %s2084_s21 = scalar_lea.vmem %s2083_s22, %s1800_s18 }
  0x4d   : > { %v702_v8 = vadd.f32 %v1531_v4, %v701_v7 }
  0x4f   : > { %v1873_v9 = vsel %vm703_vm2, %v1531_v4, %v702_v8 }
  0xba   : > { %v697_v10 = vpop.xlane.xlu0 %696 }
  0xbb   : > { %v705_v11 = vmul.f32 %v1873_v9, %v697_v10 }
  0xbd   : > { %v706_v12 = vsub.f32 %v1869_v1, %v705_v11 }
  0xbf   : > { %v707_v13 = vmul.f32 %v706_v12, %v706_v12 }
  0xc1   : > { %v708_v14 = vsel %vm694_vm1, %v707_v13, 0.0 }
  0xc2   : > { %709 = vadd.xlane.f32.xlu0 %v708_v14 }
 0x135   : > { %v710_v17 = vpop.xlane.xlu0 %709 }
 0x136   : > { %v711_v18 = vmul.f32 %v710_v17, %v1873_v9 }
 0x138   : > { %v712_v19 = vadd.f32 1e-05, %v711_v18 }
 0x13a   : > { %1532 = vrsqrt.f32 %v712_v19  ;;  %vm719_vm4 = vweird.f32 %v712_v19 }
 0x140   : > { %v1533_v20 = vpop.eup %1532 }
 0x141   : > { %v714_v21 = vmul.f32 %v1533_v20, %v712_v19  ;;  %vm720_vm3 = vweird.f32 %v1533_v20  ;;  %v1433_v19 = vld [vmem:[%s2080_s15 + $0x8] sm:$0xff] }
 0x142   : > { %vm721_vm5 = vmor %vm719_vm4, %vm720_vm3  ;;  %920 = vmatpush.bf16.msrb.mxu0 %v1433_v19 }
 0x143   : > { %v715_v22 = vmul.f32 %v1533_v20, %v714_v21 }
 0x145   : > { %v716_v23 = vmul.f32 0.5, %v715_v22 }
 0x147   : > { %v717_v24 = vsub.f32 1.5, %v716_v23 }
 0x149   : > { %v718_v25 = vmul.f32 %v1533_v20, %v717_v24 }
 0x14b   : > { %v722_v27 = vsel %vm721_vm5, %v1533_v20, %v718_v25  ;;  %v1432_v20 = vld [vmem:[%s2080_s15] sm:$0xff] }
 0x14c   : > { %v723_v28 = vmul.f32 %v722_v27, %v706_v12  ;;  %921 = vmatpush.bf16.msrb.mxu0 %v1432_v20 }
 0x14e   : > { %v727_v30 = vmul.f32 %v1522_v26, %v723_v28  ;;  %v1525_v26 = vld [vmem:[%s2082_s19] ss:$0 sm:$0xff] }
 0x150   : > { %v731_v31 = vadd.f32 %v1523_v29, %v727_v30 }
 0x152   : > { %v732_v32 = vpack.c.bf16 %v731_v31, %v731_v31 }
 0x154   : > { %1367 = vmatmul.msk.bf16.vlgmr.msra.gmra.mxu0 %vm694_vm1, %v732_v32 }
 0x1d1   : > { %v765_v34 = vpop.f32.mrf.mxu0 }
 0x1d2   : > { %v766_v35 = vadd.f32 %v1524_v33, %v765_v34 }
 0x1d4   : > { %v769_v36 = vpack.c.bf16 %v766_v35, %v766_v35 }
 0x1d6   : > { %v774_v37 = vunpack.c.l.b16 %v769_v36 }
 0x1d8   : > { %v775_v38 = vpack.c.b16 %v774_v37, %v774_v37  ;;  %v1435_v37 = vld [vmem:[%s1848_s28 + $0x8] sm:$0xff] }
 0x1d9   : > { %v767_v39 = vpop.f32.mrf.mxu0 }
 0x1da   : > { %835 = vrot.lane.b32.xlu0 %v775_v38, %s1643_s27  ;;  %811 = vrot.lane.b32.xlu2 %v775_v38, %s1644_s29 }
 0x1db   : > { %776 = vrot.lane.b32.xlu1 %v775_v38, %s1645_s26 }
 0x234   : > { %v812_v40 = vpop.permute.xlu2 %811 }
 0x235   : > { %v818_v41 = vsel %vm816_vm6, %v812_v40, 0 }
 0x236   : > { %827 = vmatpush.bf16.msra.mxu2 %v818_v41  ;;  %v1442_v41 = vld [vmem:[%s1862_s8 + $0x30] sm:$0xff] }
 0x24c   : > { %v836_v42 = vpop.permute.xlu0 %835 }
 0x24d   : > { %v777_v43 = vpop.permute.xlu1 %776  ;;  %v841_v44 = vsel %vm778_vm7, %v836_v42, 0 }
 0x24e   : > { %v783_v45 = vsel %vm778_vm7, %v777_v43, 0  ;;  %850 = vmatpush.bf16.xpose.msrb.mxu2 %v841_v44  ;;  %v1441_v43 = vld [vmem:[%s1862_s8 + $0x28] sm:$0xff]  ;;  %v1440_v44 = vld [vmem:[%s1862_s8 + $0x20] sm:$0xff] }
 0x24f   : > { %792 = vmatpush.bf16.xpose.msra.mxu1 %v783_v45 }
 0x256   : > { %1368 = vmatmul.msk.bf16.vlgmr.msra.gmra.mxu1 %vm778_vm7, %v769_v36 }
 0x257   : > { %995 = vmatpush.bf16.msrb.mxu1 %v1435_v37 }
 0x2d3   : > { %v794_v50 = vpop.f32.mrf.mxu1 }
 0x2d4   : > { %v795_v51 = vadd.f32 %v794_v50, %v771_v49 }
 0x2d6   : > { %v799_v52 = vsel %vm798_vm8, %v795_v51, -inf }
 0x2d7   : > { %800 = vmax.xlane.f32.xlu1 %v799_v52 }
 0x2db   : > { %v796_v53 = vpop.f32.mrf.mxu1 }
 0x2dc   : > { %v1526_v53 = vld [vmem:[%s2084_s21] ss:$0 sm:$0xff] }
 0x2f0   : > { %868 = vrot.lane.b32.xlu1 %v775_v38, %s1646_s4 }
 0x34a   : > { %v801_v54 = vpop.xlane.xlu1 %800 }
 0x34b   : > { %v802_v55 = vsub.f32 %v795_v51, %v801_v54 }
 0x34d   : > { %v803_v56 = vmul.f32 1.442695, %v802_v55 }
 0x34f   : > { %1534 = vpow2.f32 %v803_v56  ;;  %v1527_v56 = vld [vmem:[%s663_s0] ss:$0 sm:$0xff] }
 0x355   : > { %v1535_v57 = vpop.eup %1534 }
 0x356   : > { %v805_v58 = vsel %vm798_vm8, %v1535_v57, 0.0 }
 0x357   : > { %806 = vadd.xlane.f32.xlu2 %v805_v58 }
 0x362   : > { %v869_v62 = vpop.permute.xlu1 %868 }
 0x363   : > { %v874_v0 = vsel %vm816_vm6, %v869_v62, 0  ;;  %v1528_v62 = vld [vmem:[%s671_s6] ss:$0 sm:$0xff] }
 0x36f   : > { %833 = vrot.lane.b32.xlu2 %v775_v38, %s1647_s23  ;;  %v1434_v38 = vld [vmem:[%s1848_s28] sm:$0xff] }
 0x370   : > { %996 = vmatpush.bf16.msrb.mxu1 %v1434_v38 }
 0x3ca   : > { %v807_v59 = vpop.xlane.xlu2 %806 }
 0x3cb   : > { %1536 = vrcp.f32 %v807_v59 }
 0x3d1   : > { %v1537_v60 = vpop.eup %1536 }
 0x3d2   : > { %v809_v61 = vmul.f32 %v1537_v60, %v1535_v57  ;;  %v834_v2 = vpop.permute.xlu2 %833  ;;  %v1437_v60 = vld [vmem:[%s1862_s8 + $0x8] sm:$0xff] }
 0x3d4   : > { %v810_v63 = vpack.c.bf16 %v809_v61, %v809_v61  ;;  %v1436_v61 = vld [vmem:[%s1862_s8] sm:$0xff] }
 0x3d6   : > { %1369 = vmatmul.msk.bf16.vlgmr.msra.gmra.mxu2 %vm798_vm8, %v810_v63 }
 0x3d7   : > { %883 = vmatpush.bf16.msra.mxu2 %v874_v0 }
 0x3e6   : > { %1370 = vmatmul.msk.bf16.vlgmr.msrb.gmra.mxu2 %vm778_vm7, %v834_v2 }
 0x459   : > { %v829_v3 = vpop.f32.mrf.mxu2 }
 0x461   : > { %v831_v4 = vpop.f32.mrf.mxu2 }
 0x469   : > { %v852_v5 = vpop.f32.mrf.mxu2 }
 0x46a   : > { %v853_v6 = vadd.f32 %v852_v5, %v771_v49  ;;  %v1529_v5 = vld [vmem:[%s679_s7] ss:$0 sm:$0xff] }
 0x46c   : > { %v856_v7 = vsel %vm798_vm8, %v853_v6, -inf }
 0x46d   : > { %857 = vmax.xlane.f32.xlu0 %v856_v7 }
 0x471   : > { %v854_v8 = vpop.f32.mrf.mxu2 }
 0x4e0   : > { %v858_v10 = vpop.xlane.xlu0 %857 }
 0x4e1   : > { %v859_v11 = vsub.f32 %v853_v6, %v858_v10 }
 0x4e3   : > { %v860_v12 = vmul.f32 1.442695, %v859_v11 }
 0x4e5   : > { %1538 = vpow2.f32 %v860_v12 }
 0x4eb   : > { %v1539_v13 = vpop.eup %1538 }
 0x4ec   : > { %v862_v14 = vsel %vm798_vm8, %v1539_v13, 0.0 }
 0x4ed   : > { %863 = vadd.xlane.f32.xlu2 %v862_v14 }
 0x560   : > { %v864_v15 = vpop.xlane.xlu2 %863 }
 0x561   : > { %1540 = vrcp.f32 %v864_v15 }
 0x567   : > { %v1541_v16 = vpop.eup %1540 }
 0x568   : > { %v866_v17 = vmul.f32 %v1541_v16, %v1539_v13 }
 0x56a   : > { %v867_v18 = vpack.c.bf16 %v866_v17, %v866_v17 }
 0x56c   : > { %1371 = vmatmul.msk.bf16.vlgmr.msra.gmra.mxu2 %vm798_vm8, %v867_v18 }
 0x5ef   : > { %v885_v21 = vpop.f32.mrf.mxu2 }
 0x5f0   : > { %890 = vrot.lane.b32.xlu1 %v885_v21, %s1648_s16 }
 0x5f7   : > { %v887_v22 = vpop.f32.mrf.mxu2 }
 0x662   : > { %v891_v23 = vpop.permute.xlu1 %890 }
 0x663   : > { %v893_v24 = vsel %vm778_vm7, %v829_v3, %v891_v23 }
 0x664   : > { %v894_v25 = vpack.c.bf16 %v893_v24, %v893_v24 }
 0x666   : > { %1380 = vmatmul.msk.bf16.vlgmr.msrb.gmra.mxu0 %vm694_vm1, %v894_v25 }
 0x6e3   : > { %v923_v27 = vpop.f32.mrf.mxu0 }
 0x6e4   : > { %v927_v28 = vadd.f32 %v923_v27, %v1869_v1  ;;  %v1443_v1 = vld [vmem:[%s1862_s8 + $0x38] sm:$0xff] }
 0x6e5   : > { %1072 = vmatpush.bf16.msra.mxu3 %v1443_v1 }
 0x6e6   : > { %v932_v29 = vadd.f32 %v1525_v26, %v927_v28 }
 0x6e8   : > { %v935_v30 = vsel %vm694_vm1, %v932_v29, 0.0 }
 0x6e9   : > { %936 = vadd.xlane.f32.xlu0 %v935_v30  ;;  %1073 = vmatpush.bf16.msra.mxu3 %v1442_v41 }
 0x6eb   : > { %v925_v31 = vpop.f32.mrf.mxu0 }
 0x6ed   : > { %1074 = vmatpush.bf16.msra.mxu3 %v1441_v43 }
 0x6f1   : > { %1075 = vmatpush.bf16.msra.mxu3 %v1440_v44 }
 0x6f5   : > { %1076 = vmatpush.bf16.msra.mxu3 %v1439_v48 }
 0x75c   : > { %v937_v32 = vpop.xlane.xlu0 %936 }
 0x75d   : > { %v938_v33 = vmul.f32 %v937_v32, %v1873_v9 }
 0x75f   : > { %v939_v34 = vsub.f32 %v932_v29, %v938_v33 }
 0x761   : > { %v940_v35 = vmul.f32 %v939_v34, %v939_v34 }
 0x763   : > { %v941_v36 = vsel %vm694_vm1, %v940_v35, 0.0 }
 0x764   : > { %942 = vadd.xlane.f32.xlu2 %v941_v36 }
 0x7d7   : > { %v943_v39 = vpop.xlane.xlu2 %942 }
 0x7d8   : > { %v944_v40 = vmul.f32 %v943_v39, %v1873_v9  ;;  %v1438_v9 = vld [vmem:[%s1862_s8 + $0x10] sm:$0xff]  ;;  %s2087_s8 = sld [smem:[#allocation8_spill]] }
 0x7d9   : > { %1077 = vmatpush.bf16.msra.mxu3 %v1438_v9 }
 0x7da   : > { %v945_v42 = vadd.f32 1e-05, %v944_v40 }
 0x7dc   : > { %1542 = vrsqrt.f32 %v945_v42  ;;  %vm952_vm10 = vweird.f32 %v945_v42 }
 0x7dd   : > { %1078 = vmatpush.bf16.msra.mxu3 %v1437_v60 }
 0x7de   : > { %p1422_p1 = scmp.ne.s32.totalorder %s2087_s8, 1 }
 0x7e1   : > { %1079 = vmatpush.bf16.msra.mxu3 %v1436_v61 }
 0x7e2   : > { %v1543_v45 = vpop.eup %1542 }
 0x7e3   : > { %v947_v47 = vmul.f32 %v1543_v45, %v945_v42  ;;  %vm953_vm9 = vweird.f32 %v1543_v45 }
 0x7e4   : > { %vm954_vm11 = vmor %vm952_vm10, %vm953_vm9 }
 0x7e5   : > { %v948_v49 = vmul.f32 %v1543_v45, %v947_v47 }
 0x7e7   : > { %v949_v50 = vmul.f32 0.5, %v948_v49 }
 0x7e9   : > { %v950_v51 = vsub.f32 1.5, %v949_v50 }
 0x7eb   : > { %v951_v52 = vmul.f32 %v1543_v45, %v950_v51 }
 0x7ed   : > { %v955_v54 = vsel %vm954_vm11, %v1543_v45, %v951_v52 }
 0x7ee   : > { %v956_v55 = vmul.f32 %v955_v54, %v939_v34 }
 0x7f0   : > { %v960_v57 = vmul.f32 %v1526_v53, %v956_v55 }
 0x7f2   : > { %v964_v58 = vadd.f32 %v1527_v56, %v960_v57 }
 0x7f4   : > { %v965_v59 = vpack.c.bf16 %v964_v58, %v964_v58 }
 0x7f6   : > { %1389 = vmatmul.msk.bf16.vlgmr.msrb.gmra.mxu1 %vm694_vm1, %v965_v59 }
 0x873   : > { %v998_v63 = vpop.f32.mrf.mxu1 }
 0x874   : > { %v999_v0 = vadd.f32 %v1528_v62, %v998_v63 }
 0x876   : > { %v1002_v2 = vmax.f32 %v999_v0, 0.0 }
 0x878   : > { %v1003_v3 = vpack.c.bf16 %v1002_v2, %v1002_v2 }
 0x87a   : > { %1080 = vmatmul.bf16.vlgmr.msra.gmra.mxu3 %v1003_v3 }
 0x87b   : > { %v1000_v4 = vpop.f32.mrf.mxu1 }
 0x8fd   : > { %v1081_v6 = vpop.f32.mrf.mxu3 }
 0x8fe   : > { %v1082_v7 = vadd.f32 %v1529_v5, %v1081_v6 }
 0x900   : > { %v1085_v8 = vadd.f32 %v1082_v7, %v932_v29 }
 0x901   : > { %1090 = sbr.rel (%p1422_p1) target bundleno = 2450 (0x992), region = 84 }
 0x902   : > { %1086 = vst.msk [vmem:[#allocation2] sm:$0xff] %vm694_vm1, %v1085_v8 }
 0x905   : > { %v1083_v10 = vpop.f32.mrf.mxu3 }
 0x906   : > { %vm1114_vm12 = vcmask 57344   ;;  %1109 = vmatpush.msra.mxu0 %v1085_v8  ;;  %vm1134_vm1 = vcmask 253952  }
 0x907   : > { %v1115_v11 = vsel %vm1114_vm12, %v1906_v46, 0.0  ;;  %1423 = vmatmul.msk.f32.vlgmr.msra.gmra.mxu0 %vm798_vm8, %v1906_v46 }
 0x908   : > { %1116 = vadd.xlane.f32.xlu0 %v1115_v11 }
 0x97b   : > { %v1117_v12 = vpop.xlane.xlu0 %1116 }
 0x97c   : > { %v1118_v13 = vmax.f32 %v1117_v12, 1.0 }
 0x97e   : > { %1544 = vrcp.f32 %v1118_v13  ;;  %v1130_v17 = vand.u32 2147483648, %v1118_v13  ;;  %v1128_v19 = vand.u32 2147483647, %v1118_v13  ;;  %vm1124_vm14 = vweird.f32 %v1118_v13 }
 0x980   : > { %v1131_v22 = vor.u32 1.1754944e-38, %v1130_v17  ;;  %vm1129_vm0 = vcmp.eq.f32.partialorder %v1128_v19, 8.507059e+37 }
 0x984   : > { %v1545_v14 = vpop.eup %1544  ;;  %v1111_v21 = vpop.f32.mrf.mxu0 }
 0x985   : > { %v1120_v15 = vmul.f32 %v1545_v14, %v1118_v13  ;;  %vm1125_vm13 = vweird.f32 %v1545_v14 }
 0x986   : > { %vm1126_vm15 = vmor %vm1124_vm14, %vm1125_vm13 }
 0x987   : > { %v1121_v16 = vsub.f32 1.0, %v1120_v15 }
 0x989   : > { %v1122_v18 = vmul.f32 %v1545_v14, %v1121_v16 }
 0x98b   : > { %v1123_v20 = vadd.f32 %v1545_v14, %v1122_v18 }
 0x98d   : > { %v1127_v23 = vsel %vm1126_vm15, %v1545_v14, %v1123_v20 }
 0x98e   : > { %v1132_v46 = vsel %vm1129_vm0, %v1131_v22, %v1127_v23 }
 0x98f   : > { %v1133_v24 = vmul.f32 %v1132_v46, %v1111_v21 }
 0x991   : > { %1135 = vst.msk [vmem:[%s1866_s13] sm:$0x1] %vm1134_vm1, %v1133_v24 }
 0x992 PF: > { %s2088_s6 = sld [smem:[#allocation9_spill]]  ;;  %s1147_s11 = sshll.u32 %s1866_s13, 4  ;;  %s1148_s11 = int_to_ptr.vmem [resolvable:$true] %s1147_s11 }
 0x993   : > { %s2089_s23 = sld [smem:[#allocation27_spill]]  ;;  %s2091_s24 = sand.u32 1, %s1616_s30  }
 0x994   : > { %s1137_s19 = scalar_lea.sflag [#allocation4], %s2091_s24 }
 0x999   : > { %s1145_s16 = scalar_lea.hbm %s2089_s23, %s2088_s6  ;;  %s1566_s27 = scalar_lea.hbm %s2089_s23, 2 }
 0x99a   : > { %s1149_s20 = sshll.u32 %s1145_s16, 4  ;;  %s1150_s20 = int_to_ptr.hbm [resolvable:$true] %s1149_s20 }
 0x99b   : > { %s1560_s28 = sshra.s32 %s1150_s20, 4  ;;  %s1561_s28 = int_to_ptr.hbm [resolvable:$true] %s1560_s28 }
 0x99c   : > { %s1562_s14 = scalar_lea.hbm %s1561_s28, 1  ;;  %p1567_p6 = scmp.lt.s32.totalorder %s1561_s28, %s2089_s23 }
 0x99d   : > { %p1563_p2 = scmp.ne.s32.totalorder %s1561_s28, %s1562_s14  ;;  %p1568_p7 = scmp.lt.s32.totalorder %s1566_s27, %s1562_s14 }
 0x99f   : > { %p1564_p4 = pnand %p1563_p2, %p1773_p3  ;;  %p1569_p8 = por %p1568_p7, %p1567_p6 }
 0x9a1   : > { %p1565_p5 = pneg %p1564_p4 }
 0x9a3   : > { %p1570_p10 = pnand %p1569_p8, %p1565_p5 }
 0x9a5   : > { %1573 = shalt.err (!%p1570_p10)
}
 0x9a6   : > { %1444 = dma.vmem_to_hbm [thread:$0]  (%p1773_p3), %s1148_s11, 16, %s1150_s20, %s1137_s19  }
 0x9a7 PF: > { %s2092_s13 = sld [smem:[#allocation12_spill]] }
 0x9a8   : > { %s2093_s17 = sld [smem:[#allocation6_spill]] }
 0x9ad   : > { %p1450_p11 = scmp.ge.s32.totalorder %s2092_s13, 2 }
 0x9ae   : > { %s1161_s0 = sand.u32 1, %s2093_s17  }
 0x9af   : > { %p1447_p12 = pnand %p1450_p11, %p1783_p9  ;;  %s1162_s12 = scalar_lea.sflag [#allocation4], %s1161_s0 }
 0x9b1   : > { %p1448_p13 = pneg %p1447_p12 }
 0x9b3   : > { %1607 = dma.done.wait (%p1448_p13), %s1162_s12, 16  }
 0x9b4   : > { %1609 = vsyncadd (%p1448_p13), %s1162_s12, 4294967280  ;;  %s27_s20 = sadd.s32 1, %s2092_s13   ;;  %s2095_s4 = sld [smem:[#allocation7_spill]] }
 0x9b5   : > { %p24_p0 = scmp.ge.s32.totalorder %s27_s20, 6   ;;  %s2096_s15 = sld [smem:[#allocation17_spill]] }
 0x9b6   : > { %s2097_s16 = sld [smem:[#allocation10_spill]]  ;;  %s2101_s29 = smov %s1616_s30 }
 0x9b7   : > { %s2098_s17 = sld [smem:[#allocation11_spill]]  ;;  %26 = sbr.rel (!%p24_p0) target bundleno = 15 (0xf), region = 158 }
 0x9b8   : > { %s2099_s18 = sld [smem:[#allocation13_spill]] }
 0x9b9   : > { %s2100_s19 = sld [smem:[#allocation15_spill]] }
 0x9ba   : > { %s2102_s30 = smov %s2095_s4 }
 0x9bc   :  { %1167 = vsyncpa [#allocation4], 1 }
 0x9bd   :  { %1169 = vsyncpa [#allocation4 + $0x1], 1 }

</bundles_post_ra>
